<compile_context>
chip_gen: v6e
topology: v6e:2x2x1
jax: 0.10.0
libtpu: 0.0.40
codegen_flags: <defaults>
</compile_context>

<pallas_src>
import functools

import jax
import jax.numpy as jnp
from jax.experimental import pallas as pl
from jax.experimental.pallas import tpu as pltpu

_VMEM = pl.BlockSpec(memory_space=pltpu.MemorySpace.VMEM)

_NC_PAD = 128      # padded width of the fused head output (lane-dense stores)
_CONV_PAD = 128    # padded width of the fused 1x1x1-conv output (3*32 -> 128)
_BIAS_W = 256      # lane width of the fused bias slab

# row offsets of the individual weights inside the fused (1280, 128) bf16 weight slab
_W2_OFF, _W3_OFF, _W4_OFF = 0, 256, 384
_WC_OFF, _WFT_OFF, _WFB_OFF = 512, 1024, 1152
_WSLAB_ROWS = 1280


# ----------------------------- fused Pallas kernel -----------------------------------

def _fused_kernel(feat_ref, radio_ref, w1_ref, wslab_ref, bias_ref, out_ref,
                  *, batch, spatial):
    """radioFNN + (Conv3d 1x1x1 -> ReLU -> global AvgPool -> concat -> ReLU -> Linear)
    for all three branches, fused into one kernel body.

    Weights arrive pre-packed in bf16; all matmuls accumulate in f32."""
    f32 = jnp.float32
    bf16 = jnp.bfloat16

    def mm(a, w):                       # bf16 MXU matmul, f32 accumulation
        return jnp.dot(a.astype(bf16), w, preferred_element_type=f32)

    # Static slices of the fused weight / bias slabs (sublane/lane aligned).
    w2 = wslab_ref[_W2_OFF:_W2_OFF + 256, :]
    w3 = wslab_ref[_W3_OFF:_W3_OFF + 128, :]
    w4 = wslab_ref[_W4_OFF:_W4_OFF + 128, :]
    wc = wslab_ref[_WC_OFF:_WC_OFF + 512, :]
    wft = wslab_ref[_WFT_OFF:_WFT_OFF + 128, :]
    wfb = wslab_ref[_WFB_OFF:_WFB_OFF + 128, :]
    b1 = bias_ref[0:1, :]
    b2 = bias_ref[1:2, 0:128]
    b3 = bias_ref[2:3, 0:128]
    b4 = bias_ref[3:4, 0:128]
    bc = bias_ref[4:5, 0:128]
    bfh = bias_ref[5:6, 0:128]

    # ---- radio FNN: 384 -> 256 -> 128 -> 64 -> 32 ----------------------------------
    # (w3/w4 are zero-padded to 128 lanes; padded columns stay exactly 0 through the
    #  ReLU chain and contribute nothing downstream.)
    h = jnp.maximum(mm(radio_ref[...], w1_ref[...]) + b1, 0.0)     # (B, 256)
    h = jnp.maximum(mm(h, w2) + b2, 0.0)                           # (B, 128)
    h = jnp.maximum(mm(h, w3) + b3, 0.0)                           # (B, 128), cols>=64 == 0
    radio32 = jnp.maximum(mm(h, w4) + b4, 0.0)                     # (B, 128), cols>=32 == 0
    # (this ReLU is the head ReLU acting on the radio half of the concat)

    # ---- 3x Conv3d(512, 32, k=1) fused into one lane-dense matmul ------------------
    hc = jnp.maximum(mm(feat_ref[...], wc) + bc, 0.0)              # (B*S, 128)

    # ---- global AvgPool3d: in-kernel f32 averaging matrix (B, B*S) from iota -------
    # (keeps the mean exactly in f32, matching the reference; no extra input DMA)
    rows = jax.lax.broadcasted_iota(jnp.int32, (batch, batch * spatial), 0)
    cols = jax.lax.broadcasted_iota(jnp.int32, (batch, batch * spatial), 1)
    sel = (cols >= rows * spatial) & (cols < (rows + 1) * spatial)
    pool = jnp.where(sel, f32(1.0 / spatial), f32(0.0))
    pooled = jnp.dot(pool, hc, preferred_element_type=f32)         # (B, 128)
    # pooled >= 0 (mean of post-ReLU values with nonnegative weights) -> head ReLU
    # on the pooled half is a no-op.

    # ---- fused heads: block-diag pooled weight + shared radio weight ---------------
    out_ref[...] = mm(pooled, wft) + mm(radio32, wfb) + bfh        # (B, 128)


# ----------------------------- wrapper ------------------------------------------------

def covid_mtl_forward(x_feat, x_radio, packed, num_classes=(2, 2, 3)):
    """x_feat: (B, 512, D', H', W') backbone features (NCDHW); x_radio: (B, 375)."""
    b, c, d, h, w = x_feat.shape
    s = d * h * w

    # channels-last + flatten spatial dims, cast once to bf16 (matches the reference's
    # in-matmul bf16 cast, halves the activation DMA)
    feat_cl = jnp.swapaxes(x_feat.reshape(b, c, s), 1, 2).reshape(b * s, c)
    feat_cl = feat_cl.astype(jnp.bfloat16)

    # zero-pad radio features to the packed lane-aligned width, cast to bf16
    pad = packed["w1"].shape[0] - x_radio.shape[1]
    radio = jnp.pad(x_radio, ((0, 0), (0, pad))) if pad else x_radio
    radio = radio.astype(jnp.bfloat16)

    flops = 2 * (b * s * c * _CONV_PAD
                 + b * (packed["w1"].shape[0] * 256 + 256 * 128 + 3 * 128 * 128
                        + (b * s) * 128 + 2 * 128 * _NC_PAD))
    bytes_accessed = (feat_cl.size * 2 + radio.size * 2 + packed["w1"].size * 2
                      + packed["wslab"].size * 2 + packed["bias"].size * 4
                      + b * _NC_PAD * 4)

    kernel = functools.partial(_fused_kernel, batch=b, spatial=s)
    out = pl.pallas_call(
        kernel,
        out_shape=jax.ShapeDtypeStruct((b, _NC_PAD), jnp.float32),
        in_specs=[_VMEM] * 5,
        out_specs=_VMEM,
        cost_estimate=pl.CostEstimate(flops=int(flops), transcendentals=0,
                                      bytes_accessed=int(bytes_accessed)),
    )(feat_cl, radio, packed["w1"], packed["wslab"], packed["bias"])

    outs, off = [], 0
    for nc in num_classes:
        outs.append(out[:, off:off + nc])
        off += nc
    return outs


# ----------------------------- parameters ---------------------------------------------

def _linear_init(key, fan_in, fan_out):
    kw, kb = jax.random.split(key)
    scale = (2.0 / fan_in) ** 0.5
    w = scale * jax.random.normal(kw, (fan_in, fan_out), jnp.float32)
    b = 0.01 * jax.random.normal(kb, (1, fan_out), jnp.float32)
    return w, b


def init_params(key, radiofeatures=375, num_classes=(2, 2, 3)):
    """PyTorch-like (unfused, f32) parameters."""
    kfnn, kbr = jax.random.split(key)

    fnn = {}
    for i, (fi, fo) in enumerate([(radiofeatures, 256), (256, 128), (128, 64), (64, 32)]):
        w, b = _linear_init(jax.random.fold_in(kfnn, i), fi, fo)
        fnn[f"w{i + 1}"] = w
        fnn[f"b{i + 1}"] = b

    params = {"fnn": fnn}
    for j, (name, nc) in enumerate(zip(("c1", "c2", "c3"), num_classes)):
        k1, k2 = jax.random.split(jax.random.fold_in(kbr, j))
        # Conv3d(512, 32, k=1) with kaiming_normal_(mode='fan_out') -> std = sqrt(2/32)
        wc = ((2.0 / 32.0) ** 0.5) * jax.random.normal(k1, (512, 32), jnp.float32)
        bc = jnp.zeros((1, 32), jnp.float32)
        wf, bf = _linear_init(k2, 64, nc)
        params[name] = {"wc": wc, "bc": bc, "wf": wf, "bf": bf}
    return params


def pack_params(params, num_classes=(2, 2, 3)):
    """Fuse / pad / bf16-cast parameters into the kernel's lane-dense layout (once)."""
    bf16 = jnp.bfloat16
    fnn = params["fnn"]
    radio_in = fnn["w1"].shape[0]
    radio_pad = ((radio_in + 127) // 128) * 128
    w1 = jnp.pad(fnn["w1"], ((0, radio_pad - radio_in), (0, 0))).astype(bf16)  # (384,256)

    branches = [params[n] for n in ("c1", "c2", "c3")]

    # fused 1x1x1-conv weight / bias: [wc1 | wc2 | wc3 | 0-pad] -> 128 lanes
    wc = jnp.concatenate([br["wc"] for br in branches], axis=1)                 # (512, 96)
    wc = jnp.pad(wc, ((0, 0), (0, _CONV_PAD - wc.shape[1])))                    # (512,128)
    bc = jnp.concatenate([br["bc"] for br in branches], axis=1)
    bc = jnp.pad(bc, ((0, 0), (0, _CONV_PAD - bc.shape[1])))                    # (1, 128)

    # fused head weights: block-diagonal pooled half + shared radio half
    wft = jnp.zeros((_CONV_PAD, _NC_PAD), jnp.float32)
    wfb = jnp.zeros((32, _NC_PAD), jnp.float32)
    bf = jnp.zeros((1, _NC_PAD), jnp.float32)
    off = 0
    for i, (br, nc) in enumerate(zip(branches, num_classes)):
        wft = wft.at[i * 32:(i + 1) * 32, off:off + nc].set(br["wf"][:32])
        wfb = wfb.at[:, off:off + nc].set(br["wf"][32:])
        bf = bf.at[:, off:off + nc].set(br["bf"])
        off += nc

    # small weights zero-padded to 128 lanes and stacked into ONE bf16 slab
    w2 = fnn["w2"]                                                              # (256,128)
    w3 = jnp.pad(fnn["w3"], ((0, 0), (0, 128 - fnn["w3"].shape[1])))            # (128,128)
    w4 = jnp.pad(fnn["w4"], ((0, 128 - fnn["w4"].shape[0]),
                             (0, 128 - fnn["w4"].shape[1])))                    # (128,128)
    wfbp = jnp.pad(wfb, ((0, 128 - wfb.shape[0]), (0, 0)))                      # (128,128)
    wslab = jnp.concatenate([w2, w3, w4, wc, wft, wfbp], axis=0).astype(bf16)   # (1280,128)
    assert wslab.shape == (_WSLAB_ROWS, 128)

    # f32 bias slab: one row per bias, lane-padded to 256
    def row(bvec):
        return jnp.pad(bvec, ((0, 0), (0, _BIAS_W - bvec.shape[1])))
    bias = jnp.concatenate([row(fnn["b1"]), row(fnn["b2"]), row(fnn["b3"]),
                            row(fnn["b4"]), row(bc), row(bf)], axis=0)          # (6, 256)

    return {"w1": w1, "wslab": wslab, "bias": bias}


# ----------------------------- pure-JAX reference -------------------------------------
# Mirrors the module math per-branch on the unfused f32 params; dot operands are cast
# to bf16 (f32 accumulation) exactly like the kernel, so the comparison stays tight.

def _mm_bf16(a, b):
    return jnp.dot(a.astype(jnp.bfloat16), b.astype(jnp.bfloat16),
                   preferred_element_type=jnp.float32)


def ref_forward(x_feat, x_radio, params, num_classes=(2, 2, 3)):
    b, c, d, h, w = x_feat.shape
    s = d * h * w
    feat = jnp.swapaxes(x_feat.reshape(b, c, s), 1, 2)                    # (B, S, C)

    p = params["fnn"]
    r = x_radio
    for i in range(1, 4):
        r = jnp.maximum(_mm_bf16(r, p[f"w{i}"]) + p[f"b{i}"], 0.0)
    r = _mm_bf16(r, p["w4"]) + p["b4"]

    outs = []
    for name, nc in zip(("c1", "c2", "c3"), num_classes):
        q = params[name]
        hh = _mm_bf16(feat.reshape(b * s, c), q["wc"]).reshape(b, s, 32) + q["bc"]
        hh = jnp.maximum(hh, 0.0)
        pooled = hh.mean(axis=1)                                          # (B, 32)
        z = jnp.maximum(jnp.concatenate([pooled, r], axis=1), 0.0)        # (B, 64)
        outs.append(_mm_bf16(z, q["wf"]) + q["bf"])
    return outs


# ----------------------------- main ----------------------------------------------------

if __name__ == "__main__":
    key = jax.random.PRNGKey(0)
    k_feat, k_radio, k_par = jax.random.split(key, 3)

    # SqueezeNet3D output for sample_depth=32, sample_size=64 -> (B, 512, 1, 2, 2)
    B, C, D, H, W = 2, 512, 1, 2, 2
    RADIO = 375
    NUM_CLASSES = (2, 2, 3)

    x_feat = jax.random.normal(k_feat, (B, C, D, H, W), jnp.float32)
    x_radio = jax.random.normal(k_radio, (B, RADIO), jnp.float32)

    params = init_params(k_par, RADIO, NUM_CLASSES)
    packed = pack_params(params, NUM_CLASSES)

    fwd = jax.jit(functools.partial(covid_mtl_forward, num_classes=NUM_CLASSES))
    outs = fwd(x_feat, x_radio, packed)
    outs = [jax.block_until_ready(o) for o in outs]

    refs = ref_forward(x_feat, x_radio, params, NUM_CLASSES)
    for o, r in zip(outs, refs):
        assert o.shape == r.shape, (o.shape, r.shape)
        assert jnp.allclose(o, r, rtol=1e-3, atol=1e-3), (o, r)

    print("KERNEL_OK")
</pallas_src>

<mosaic_0001>
module attributes {stable_mosaic.version = 11 : i64} {
  func.func @_fused_kernel(%arg0: memref<8x512xbf16, #tpu.memory_space<vmem>>, %arg1: memref<2x384xbf16, #tpu.memory_space<vmem>>, %arg2: memref<384x256xbf16, #tpu.memory_space<vmem>>, %arg3: memref<1280x128xbf16, #tpu.memory_space<vmem>>, %arg4: memref<6x256xf32, #tpu.memory_space<vmem>>, %arg5: memref<2x128xf32, #tpu.memory_space<vmem>>) attributes {dimension_semantics = [], scalar_prefetch = 0 : i64, scratch_operands = 0 : i64, tpu.core_type = #tpu.core_type<tc>} {
    %c0 = arith.constant 0 : index
    %c0_0 = arith.constant 0 : index
    %0 = vector.load %arg3[%c0, %c0_0] : memref<1280x128xbf16, #tpu.memory_space<vmem>>, vector<256x128xbf16>
    %c256 = arith.constant 256 : index
    %c0_1 = arith.constant 0 : index
    %1 = vector.load %arg3[%c256, %c0_1] : memref<1280x128xbf16, #tpu.memory_space<vmem>>, vector<128x128xbf16>
    %c384 = arith.constant 384 : index
    %c0_2 = arith.constant 0 : index
    %2 = vector.load %arg3[%c384, %c0_2] : memref<1280x128xbf16, #tpu.memory_space<vmem>>, vector<128x128xbf16>
    %c512 = arith.constant 512 : index
    %c0_3 = arith.constant 0 : index
    %3 = vector.load %arg3[%c512, %c0_3] : memref<1280x128xbf16, #tpu.memory_space<vmem>>, vector<512x128xbf16>
    %c1024 = arith.constant 1024 : index
    %c0_4 = arith.constant 0 : index
    %4 = vector.load %arg3[%c1024, %c0_4] : memref<1280x128xbf16, #tpu.memory_space<vmem>>, vector<128x128xbf16>
    %c1152 = arith.constant 1152 : index
    %c0_5 = arith.constant 0 : index
    %5 = vector.load %arg3[%c1152, %c0_5] : memref<1280x128xbf16, #tpu.memory_space<vmem>>, vector<128x128xbf16>
    %c0_6 = arith.constant 0 : index
    %c0_7 = arith.constant 0 : index
    %6 = vector.load %arg4[%c0_6, %c0_7] : memref<6x256xf32, #tpu.memory_space<vmem>>, vector<1x256xf32>
    %c1 = arith.constant 1 : index
    %c0_8 = arith.constant 0 : index
    %7 = vector.load %arg4[%c1, %c0_8] : memref<6x256xf32, #tpu.memory_space<vmem>>, vector<1x128xf32>
    %c2 = arith.constant 2 : index
    %c0_9 = arith.constant 0 : index
    %8 = vector.load %arg4[%c2, %c0_9] : memref<6x256xf32, #tpu.memory_space<vmem>>, vector<1x128xf32>
    %c3 = arith.constant 3 : index
    %c0_10 = arith.constant 0 : index
    %9 = vector.load %arg4[%c3, %c0_10] : memref<6x256xf32, #tpu.memory_space<vmem>>, vector<1x128xf32>
    %c4 = arith.constant 4 : index
    %c0_11 = arith.constant 0 : index
    %10 = vector.load %arg4[%c4, %c0_11] : memref<6x256xf32, #tpu.memory_space<vmem>>, vector<1x128xf32>
    %c5 = arith.constant 5 : index
    %c0_12 = arith.constant 0 : index
    %11 = vector.load %arg4[%c5, %c0_12] : memref<6x256xf32, #tpu.memory_space<vmem>>, vector<1x128xf32>
    %c0_13 = arith.constant 0 : index
    %c0_14 = arith.constant 0 : index
    %12 = vector.load %arg1[%c0_13, %c0_14] : memref<2x384xbf16, #tpu.memory_space<vmem>>, vector<2x384xbf16>
    %c0_15 = arith.constant 0 : index
    %c0_16 = arith.constant 0 : index
    %13 = vector.load %arg2[%c0_15, %c0_16] : memref<384x256xbf16, #tpu.memory_space<vmem>>, vector<384x256xbf16>
    %cst = arith.constant dense<0.000000e+00> : vector<2x256xf32>
    %14 = tpu.matmul %12, %13, %cst {dimension_numbers = #tpu.dot_dimension_numbers<[1], [0], [0], [1], [0, 0, 1, 1], [], []>} : vector<2x384xbf16>, vector<384x256xbf16>, vector<2x256xf32> -> vector<2x256xf32>
    %15 = vector.broadcast %6 : vector<1x256xf32> to vector<2x256xf32>
    %16 = arith.addf %14, %15 : vector<2x256xf32>
    %cst_17 = arith.constant 0.000000e+00 : f32
    %17 = vector.broadcast %cst_17 : f32 to vector<2x256xf32>
    %18 = arith.maximumf %16, %17 : vector<2x256xf32>
    %19 = arith.truncf %18 : vector<2x256xf32> to vector<2x256xbf16>
    %cst_18 = arith.constant dense<0.000000e+00> : vector<2x128xf32>
    %20 = tpu.matmul %19, %0, %cst_18 {dimension_numbers = #tpu.dot_dimension_numbers<[1], [0], [0], [1], [0, 0, 1, 1], [], []>} : vector<2x256xbf16>, vector<256x128xbf16>, vector<2x128xf32> -> vector<2x128xf32>
    %21 = vector.broadcast %7 : vector<1x128xf32> to vector<2x128xf32>
    %22 = arith.addf %20, %21 : vector<2x128xf32>
    %cst_19 = arith.constant 0.000000e+00 : f32
    %23 = vector.broadcast %cst_19 : f32 to vector<2x128xf32>
    %24 = arith.maximumf %22, %23 : vector<2x128xf32>
    %25 = arith.truncf %24 : vector<2x128xf32> to vector<2x128xbf16>
    %cst_20 = arith.constant dense<0.000000e+00> : vector<2x128xf32>
    %26 = tpu.matmul %25, %1, %cst_20 {dimension_numbers = #tpu.dot_dimension_numbers<[1], [0], [0], [1], [0, 0, 1, 1], [], []>} : vector<2x128xbf16>, vector<128x128xbf16>, vector<2x128xf32> -> vector<2x128xf32>
    %27 = vector.broadcast %8 : vector<1x128xf32> to vector<2x128xf32>
    %28 = arith.addf %26, %27 : vector<2x128xf32>
    %cst_21 = arith.constant 0.000000e+00 : f32
    %29 = vector.broadcast %cst_21 : f32 to vector<2x128xf32>
    %30 = arith.maximumf %28, %29 : vector<2x128xf32>
    %31 = arith.truncf %30 : vector<2x128xf32> to vector<2x128xbf16>
    %cst_22 = arith.constant dense<0.000000e+00> : vector<2x128xf32>
    %32 = tpu.matmul %31, %2, %cst_22 {dimension_numbers = #tpu.dot_dimension_numbers<[1], [0], [0], [1], [0, 0, 1, 1], [], []>} : vector<2x128xbf16>, vector<128x128xbf16>, vector<2x128xf32> -> vector<2x128xf32>
    %33 = vector.broadcast %9 : vector<1x128xf32> to vector<2x128xf32>
    %34 = arith.addf %32, %33 : vector<2x128xf32>
    %cst_23 = arith.constant 0.000000e+00 : f32
    %35 = vector.broadcast %cst_23 : f32 to vector<2x128xf32>
    %36 = arith.maximumf %34, %35 : vector<2x128xf32>
    %c0_24 = arith.constant 0 : index
    %c0_25 = arith.constant 0 : index
    %37 = vector.load %arg0[%c0_24, %c0_25] : memref<8x512xbf16, #tpu.memory_space<vmem>>, vector<8x512xbf16>
    %cst_26 = arith.constant dense<0.000000e+00> : vector<8x128xf32>
    %38 = tpu.matmul %37, %3, %cst_26 {dimension_numbers = #tpu.dot_dimension_numbers<[1], [0], [0], [1], [0, 0, 1, 1], [], []>} : vector<8x512xbf16>, vector<512x128xbf16>, vector<8x128xf32> -> vector<8x128xf32>
    %39 = vector.broadcast %10 : vector<1x128xf32> to vector<8x128xf32>
    %40 = arith.addf %38, %39 : vector<8x128xf32>
    %cst_27 = arith.constant 0.000000e+00 : f32
    %41 = vector.broadcast %cst_27 : f32 to vector<8x128xf32>
    %42 = arith.maximumf %40, %41 : vector<8x128xf32>
    %43 = tpu.iota {dimensions = array<i32: 0>} : vector<2x8xi32>
    %44 = tpu.iota {dimensions = array<i32: 1>} : vector<2x8xi32>
    %c4_i32 = arith.constant 4 : i32
    %45 = vector.broadcast %c4_i32 : i32 to vector<2x8xi32>
    %46 = arith.muli %43, %45 : vector<2x8xi32>
    %47 = arith.cmpi sge, %44, %46 : vector<2x8xi32>
    %c1_i32 = arith.constant 1 : i32
    %48 = vector.broadcast %c1_i32 : i32 to vector<2x8xi32>
    %49 = arith.addi %43, %48 : vector<2x8xi32>
    %c4_i32_28 = arith.constant 4 : i32
    %50 = vector.broadcast %c4_i32_28 : i32 to vector<2x8xi32>
    %51 = arith.muli %49, %50 : vector<2x8xi32>
    %52 = arith.cmpi slt, %44, %51 : vector<2x8xi32>
    %53 = arith.andi %47, %52 : vector<2x8xi1>
    %cst_29 = arith.constant 2.500000e-01 : f32
    %cst_30 = arith.constant 0.000000e+00 : f32
    %54 = vector.broadcast %cst_29 : f32 to vector<2x8xf32>
    %55 = vector.broadcast %cst_30 : f32 to vector<2x8xf32>
    %56 = arith.select %53, %54, %55 : vector<2x8xi1>, vector<2x8xf32>
    %cst_31 = arith.constant dense<0.000000e+00> : vector<2x128xf32>
    %57 = tpu.matmul %56, %42, %cst_31 {dimension_numbers = #tpu.dot_dimension_numbers<[1], [0], [0], [1], [0, 0, 1, 1], [], []>} : vector<2x8xf32>, vector<8x128xf32>, vector<2x128xf32> -> vector<2x128xf32>
    %58 = arith.truncf %57 : vector<2x128xf32> to vector<2x128xbf16>
    %cst_32 = arith.constant dense<0.000000e+00> : vector<2x128xf32>
    %59 = tpu.matmul %58, %4, %cst_32 {dimension_numbers = #tpu.dot_dimension_numbers<[1], [0], [0], [1], [0, 0, 1, 1], [], []>} : vector<2x128xbf16>, vector<128x128xbf16>, vector<2x128xf32> -> vector<2x128xf32>
    %60 = arith.truncf %36 : vector<2x128xf32> to vector<2x128xbf16>
    %cst_33 = arith.constant dense<0.000000e+00> : vector<2x128xf32>
    %61 = tpu.matmul %60, %5, %cst_33 {dimension_numbers = #tpu.dot_dimension_numbers<[1], [0], [0], [1], [0, 0, 1, 1], [], []>} : vector<2x128xbf16>, vector<128x128xbf16>, vector<2x128xf32> -> vector<2x128xf32>
    %62 = arith.addf %59, %61 : vector<2x128xf32>
    %63 = vector.broadcast %11 : vector<1x128xf32> to vector<2x128xf32>
    %64 = arith.addf %62, %63 : vector<2x128xf32>
    %c0_34 = arith.constant 0 : index
    %c0_35 = arith.constant 0 : index
    %65 = vector.load %arg5[%c0_34, %c0_35] : memref<2x128xf32, #tpu.memory_space<vmem>>, vector<2x128xf32>
    tpu.vector_store %arg5[%c0_34, %c0_35], %64 {strides = array<i32>} : memref<2x128xf32, #tpu.memory_space<vmem>>, vector<2x128xf32>,
    return
  }
}

</mosaic_0001>

<bundles_post_ra>
// kernel: covid_mtl_forward.1
= control target key start
LH: loop header
LB: loop body
LE: loop exit
PB: predicated region body
PF: predicated region fallthrough
CT: control target
= control target key end

     0   :  { %10 = vsyncpa [#allocation3], 0  ;;  %s2167_s0 = inlined_call_operand.vmem [shape: bf16[8,512], index: 0, kind: input, shape index: {}]   ;;  %s2168_s1 = inlined_call_operand.vmem [shape: bf16[2,384], index: 1, kind: input, shape index: {}]   ;;  %s2169_s2 = inlined_call_operand.hbm [shape: bf16[384,256], index: 2, kind: input, shape index: {}]   ;;  %s2170_s3 = inlined_call_operand.hbm [shape: bf16[1280,128], index: 3, kind: input, shape index: {}]   ;;  %s2171_s4 = inlined_call_operand.vmem [shape: f32[6,256], index: 4, kind: input, shape index: {}]   ;;  %s2172_s5 = inlined_call_operand.vmem [shape: f32[2,128], index: 5, kind: output, shape index: {}]  }
   0x1   :  { %11 = vsyncpa [#allocation5], 0  ;;  %s2038_s18 = smov [#allocation2]  }
   0x2   :  { %s21_s19 = sshll.u32 %s2038_s18, 4  ;;  %s22_s19 = int_to_ptr.vmem [resolvable:$true] %s21_s19 }
   0x3   :  { %s2002_s20 = scalar_lea.vmem %s22_s19, 6144  ;;  %p2007_p1 = scmp.lt.s32.totalorder %s22_s19, %s22_s19 }
   0x4   :  { %p2003_p0 = scmp.ne.s32.totalorder %s22_s19, %s2002_s20  ;;  %p2008_p2 = scmp.lt.s32.totalorder %s2002_s20, %s2002_s20 }
   0x6   :  { %p2009_p3 = por %p2008_p2, %p2007_p1 }
   0x8   :  { %p2010_p4 = pnand %p2009_p3, %p2003_p0 }
   0xa   :  { %2013 = shalt.err (!%p2010_p4)
}
   0xb   :  { %s2039_s21 = smov 128   ;;  %s2040_s22 = smov 8  }
   0xc   :  { %27 = dma.hbm_to_vmem [thread:$0]  %s2169_s2, 6144, %s22_s19, [#allocation3], %s2039_s21, %s2039_s21, %s2040_s22  }
   0xd   :  { %s2041_s25 = smov [#allocation4]  }
   0xe   :  { %s33_s26 = sshll.u32 %s2041_s25, 4  ;;  %s34_s26 = int_to_ptr.vmem [resolvable:$true] %s33_s26 }
   0xf   :  { %s2022_s27 = scalar_lea.vmem %s34_s26, 10240  ;;  %p2027_p6 = scmp.lt.s32.totalorder %s34_s26, %s34_s26 }
  0x10   :  { %p2023_p5 = scmp.ne.s32.totalorder %s34_s26, %s2022_s27  ;;  %p2028_p7 = scmp.lt.s32.totalorder %s2022_s27, %s2022_s27 }
  0x12   :  { %p2029_p8 = por %p2028_p7, %p2027_p6 }
  0x14   :  { %p2030_p9 = pnand %p2029_p8, %p2023_p5 }
  0x16   :  { %2033 = shalt.err (!%p2030_p9)
}
  0x17   :  { %s2042_s28 = smov 64   ;;  %s2043_s29 = smov 4  }
  0x18   :  { %39 = dma.hbm_to_vmem [thread:$0]  %s2170_s3, 10240, %s34_s26, [#allocation5], %s2042_s28, %s2042_s28, %s2043_s29  }
  0x19   :  { %2034 = dma.done.wait [#allocation3], 6144  }
  0x1a   :  { %2035 = vsyncadd [#allocation3], 4294961152 }
  0x1b   :  { %2036 = dma.done.wait [#allocation5], 10240  }
  0x1c   :  { %2037 = vsyncadd [#allocation5], 4294957056  ;;  %v2044_v0 = vmov 0   ;;  %v1838_v1 = vld [vmem:[#allocation2 + $0x74] ss:$8 sps:$4 sm:$0xff]   ;;  %v265_v25 = vlaneseq  ;;  %v1914_v58 = vld [vmem:[#allocation4 + $0x68] sm:$0xff]  }
  0x1d   :  { %615 = vmatprep.mubr.bf16.mxu1 %v2044_v0  ;;  %v1840_v2 = vld [vmem:[#allocation2 + $0x70] ss:$8 sps:$4 sm:$0xff]   ;;  %542 = vmatprep.subr.bf16.mxu0 %v1838_v1  ;;  %v1841_v3 = vld [vmem:[#allocation2 + $0x64] ss:$8 sps:$4 sm:$0xff]   ;;  %v1843_v4 = vld [vmem:[#allocation2 + $0x60] ss:$8 sps:$4 sm:$0xff]  }
  0x1e   :  { %543 = vmatpush1.bf16.msra.mxu0 %v1840_v2  ;;  %v1844_v5 = vld [vmem:[#allocation2 + $0x54] ss:$8 sps:$4 sm:$0xff]   ;;  %v1846_v6 = vld [vmem:[#allocation2 + $0x50] ss:$8 sps:$4 sm:$0xff]   ;;  %v1847_v7 = vld [vmem:[#allocation2 + $0x44] ss:$8 sps:$4 sm:$0xff]  }
  0x1f   :  { %544 = vmatprep.subr.bf16.mxu0 %v1841_v3  ;;  %v1849_v8 = vld [vmem:[#allocation2 + $0x40] ss:$8 sps:$4 sm:$0xff]   ;;  %v1861_v9 = vld [vmem:[#allocation2 + $0x174] ss:$8 sps:$4 sm:$0xff]   ;;  %v1864_v10 = vld [vmem:[#allocation2 + $0x170] ss:$8 sps:$4 sm:$0xff]  }
  0x20   :  { %v1850_v11 = vld [vmem:[#allocation2 + $0x34] ss:$8 sps:$4 sm:$0xff]   ;;  %583 = vmatprep.subr.bf16.mxu1 %v1861_v9  ;;  %v1867_v12 = vld [vmem:[#allocation2 + $0x164] ss:$8 sps:$4 sm:$0xff]   ;;  %v1870_v13 = vld [vmem:[#allocation2 + $0x160] ss:$8 sps:$4 sm:$0xff]  }
  0x21   :  { %584 = vmatpush1.bf16.msra.mxu1 %v1864_v10  ;;  %v1852_v14 = vld [vmem:[#allocation2 + $0x30] ss:$8 sps:$4 sm:$0xff]   ;;  %v1853_v15 = vld [vmem:[#allocation2 + $0x24] ss:$8 sps:$4 sm:$0xff]   ;;  %v1873_v16 = vld [vmem:[#allocation2 + $0x154] ss:$8 sps:$4 sm:$0xff]  }
  0x22   :  { %545 = vmatpush1.bf16.msra.mxu0 %v1843_v4  ;;  %585 = vmatprep.subr.bf16.mxu1 %v1867_v12  ;;  %v1876_v17 = vld [vmem:[#allocation2 + $0x150] ss:$8 sps:$4 sm:$0xff]   ;;  %v1855_v18 = vld [vmem:[#allocation2 + $0x20] ss:$8 sps:$4 sm:$0xff]   ;;  %v1879_v19 = vld [vmem:[#allocation2 + $0x144] ss:$8 sps:$4 sm:$0xff]  }
  0x23   :  { %546 = vmatprep.subr.bf16.mxu0 %v1844_v5  ;;  %v1856_v20 = vld [vmem:[#allocation2 + $0x14] ss:$8 sps:$4 sm:$0xff]   ;;  %v1858_v21 = vld [vmem:[#allocation2 + $0x10] ss:$8 sps:$4 sm:$0xff]   ;;  %v1882_v22 = vld [vmem:[#allocation2 + $0x140] ss:$8 sps:$4 sm:$0xff]  }
  0x24   :  { %v1885_v23 = vld [vmem:[#allocation2 + $0x134] ss:$8 sps:$4 sm:$0xff]   ;;  %v1859_v24 = vld [vmem:[#allocation2 + $0x4] ss:$8 sps:$4 sm:$0xff]   ;;  %v2045_v26 = vmov 1966171168  }
  0x25   :  { %586 = vmatpush1.bf16.msra.mxu1 %v1870_v13  ;;  %v285_v27 = vunpack.c.l.s4 %v2045_v26  ;;  %v1888_v28 = vld [vmem:[#allocation2 + $0x130] ss:$8 sps:$4 sm:$0xff]   ;;  %v1863_v29 = vld [vmem:[#allocation2] ss:$8 sps:$4 sm:$0xff]   ;;  %v1891_v30 = vld [vmem:[#allocation2 + $0x124] ss:$8 sps:$4 sm:$0xff]  }
  0x26   :  { %547 = vmatpush1.bf16.msra.mxu0 %v1846_v6  ;;  %587 = vmatprep.subr.bf16.mxu1 %v1873_v16  ;;  %v1865_v31 = vld [vmem:[#allocation2 + $0xf4] ss:$8 sps:$4 sm:$0xff]   ;;  %v2085_v32 = vshrl.u32 %v265_v25, 7  ;;  %v1869_v34 = vld [vmem:[#allocation2 + $0xf0] ss:$8 sps:$4 sm:$0xff]   ;;  %v1915_v60 = vld [vmem:[#allocation4 + $0x28] sm:$0xff]  }
  0x27   :  { %548 = vmatprep.subr.bf16.mxu0 %v1847_v7  ;;  %v286_v33 = vunpack.c.0.s8 %v285_v27  ;;  %v1894_v35 = vld [vmem:[#allocation2 + $0x120] ss:$8 sps:$4 sm:$0xff]   ;;  %v1871_v36 = vld [vmem:[#allocation2 + $0xe4] ss:$8 sps:$4 sm:$0xff]   ;;  %v1897_v37 = vld [vmem:[#allocation2 + $0x114] ss:$8 sps:$4 sm:$0xff]  }
  0x28   :  { %v1505_v38 = vld.sshfl [vmem:[%s2168_s1] sm:$0x13 pattern:$0x75316420]  ;;  %v1900_v42 = vld [vmem:[#allocation2 + $0x110] ss:$8 sps:$4 sm:$0xff]  }
  0x29   :  { %588 = vmatpush1.bf16.msra.mxu1 %v1876_v17  ;;  %v1875_v39 = vld [vmem:[#allocation2 + $0xe0] ss:$8 sps:$4 sm:$0xff]   ;;  %v289_v40 = vsub.s32 %v286_v33, %v2085_v32  ;;  %v283_v41 = vcombine.high %v1505_v38, %v1505_v38  ;;  %v1903_v43 = vld [vmem:[#allocation2 + $0x104] ss:$8 sps:$4 sm:$0xff]   ;;  %v1877_v45 = vld [vmem:[#allocation2 + $0xd4] ss:$8 sps:$4 sm:$0xff]  }
  0x2a   :  { %549 = vmatpush1.bf16.msra.mxu0 %v1849_v8  ;;  %589 = vmatprep.subr.bf16.mxu1 %v1879_v19  ;;  %v1881_v46 = vld [vmem:[#allocation2 + $0xd0] ss:$8 sps:$4 sm:$0xff]   ;;  %v1883_v48 = vld [vmem:[#allocation2 + $0xc4] ss:$8 sps:$4 sm:$0xff]   ;;  %v1906_v49 = vld [vmem:[#allocation2 + $0x100] ss:$8 sps:$4 sm:$0xff]  }
  0x2b   :  { %550 = vmatprep.subr.bf16.mxu0 %v1850_v11  ;;  %v297_v44 = vrot.slane %v283_v41, %v289_v40  ;;  %v290_v47 = vrot.slane %v1505_v38, %v289_v40  ;;  %v1910_v50 = vld [vmem:[#allocation4 + $0x78] sm:$0xff]   ;;  %v1887_v52 = vld [vmem:[#allocation2 + $0xc0] ss:$8 sps:$4 sm:$0xff]   ;;  %v1912_v54 = vld [vmem:[#allocation4 + $0x70] sm:$0xff]   ;;  %v2046_v13 = vmov 0.0   ;;  %vm2047_vm0 = vmmov 0  }
  0x2c   :  { %v1911_v51 = vld [vmem:[#allocation4 + $0x38] sm:$0xff]   ;;  %v1913_v56 = vld [vmem:[#allocation4 + $0x30] sm:$0xff]   ;;  %v1895_v59 = vld [vmem:[#allocation2 + $0xa4] ss:$8 sps:$4 sm:$0xff]   ;;  %vm1245_vm4 = vcmask 64512  }
  0x2d   :  { %590 = vmatpush1.bf16.msra.mxu1 %v1882_v22  ;;  %574 = vmatprep.mubr.bf16.mxu0 %v297_v44  ;;  %v298_v53 = vcombine.high %v290_v47, %v290_v47  ;;  %v1889_v55 = vld [vmem:[#allocation2 + $0xb4] ss:$8 sps:$4 sm:$0xff]   ;;  %v1893_v57 = vld [vmem:[#allocation2 + $0xb0] ss:$8 sps:$4 sm:$0xff]   ;;  %v1899_v61 = vld [vmem:[#allocation2 + $0xa0] ss:$8 sps:$4 sm:$0xff]  }
  0x2e   :  { %551 = vmatpush1.bf16.msra.mxu0 %v1852_v14  ;;  %591 = vmatprep.subr.bf16.mxu1 %v1885_v23  ;;  %v1916_v62 = vld [vmem:[#allocation4 + $0x60] sm:$0xff]   ;;  %v1901_v63 = vld [vmem:[#allocation2 + $0x94] ss:$8 sps:$4 sm:$0xff]   ;;  %v1905_v1 = vld [vmem:[#allocation2 + $0x90] ss:$8 sps:$4 sm:$0xff]   ;;  %v267_v22 = vsub.s32 0, %v2085_v32 }
  0x2f   :  { %552 = vmatprep.subr.bf16.mxu0 %v1853_v15  ;;  %v1917_v0 = vld [vmem:[#allocation4 + $0x20] sm:$0xff]   ;;  %v1918_v4 = vld [vmem:[#allocation4 + $0x58] sm:$0xff]   ;;  %v1920_v6 = vld [vmem:[#allocation4 + $0x50] sm:$0xff]  }
  0x30   :  { %v1907_v2 = vld [vmem:[#allocation2 + $0x84] ss:$8 sps:$4 sm:$0xff]   ;;  %v1909_v3 = vld [vmem:[#allocation2 + $0x80] ss:$8 sps:$4 sm:$0xff]   ;;  %v1919_v5 = vld [vmem:[#allocation4 + $0x18] sm:$0xff]  }
  0x31   :  { %592 = vmatpush1.bf16.msra.mxu1 %v1888_v28  ;;  %v1921_v7 = vld [vmem:[#allocation4 + $0x10] sm:$0xff]   ;;  %v1922_v8 = vld [vmem:[#allocation4 + $0x48] sm:$0xff]   ;;  %v1924_v10 = vld [vmem:[#allocation4 + $0x40] sm:$0xff]  }
  0x32   :  { %553 = vmatpush1.bf16.msra.mxu0 %v1855_v18  ;;  %593 = vmatprep.subr.bf16.mxu1 %v1891_v30  ;;  %v1923_v9 = vld [vmem:[#allocation4 + $0x8] sm:$0xff]   ;;  %v1925_v11 = vld [vmem:[#allocation4] sm:$0xff]   ;;  %v1926_v12 = vld [vmem:[#allocation4 + $0xb8] sm:$0xff]  }
  0x33   :  { %554 = vmatprep.subr.bf16.mxu0 %v1856_v20  ;;  %v1927_v14 = vld [vmem:[#allocation4 + $0xb0] sm:$0xff]   ;;  %v1928_v15 = vld [vmem:[#allocation4 + $0xa8] sm:$0xff]   ;;  %v1929_v16 = vld [vmem:[#allocation4 + $0xa0] sm:$0xff]  }
  0x34   :  { %v1930_v17 = vld [vmem:[#allocation4 + $0x98] sm:$0xff]   ;;  %v209_v23 = vld [vmem:[%s2171_s4] ss:$8 sm:$0x3]  ;;  %v1931_v41 = vld [vmem:[#allocation4 + $0x90] sm:$0xff]  }
  0x35   :  { %594 = vmatpush1.bf16.msra.mxu1 %v1894_v35  ;;  %v268_v26 = vrot.slane %v209_v23, %v267_v22  ;;  %v1934_v44 = vld [vmem:[#allocation4 + $0xf8] sm:$0xff]  }
  0x36   :  { %555 = vmatpush1.bf16.msra.mxu0 %v1858_v21  ;;  %595 = vmatprep.subr.bf16.mxu1 %v1897_v37 }
  0x37   :  { %556 = vmatprep.subr.bf16.mxu0 %v1859_v24  ;;  %v271_v24 = vsub.s32 1, %v2085_v32 }
  0x39   :  { %596 = vmatpush1.bf16.msra.mxu1 %v1900_v42  ;;  %v272_v27 = vrot.slane %v209_v23, %v271_v24  ;;  %v1932_v42 = vld [vmem:[#allocation4 + $0x88] sm:$0xff]  }
  0x3a   :  { %557 = vmatpush1.bf16.msra.mxu0 %v1863_v29  ;;  %597 = vmatprep.subr.bf16.mxu1 %v1903_v43  ;;  %v1933_v43 = vld [vmem:[#allocation4 + $0x80] sm:$0xff]  }
  0x3b   :  { %558 = vmatprep.subr.bf16.mxu0 %v1865_v31 }
  0x3d   :  { %598 = vmatpush1.bf16.msra.mxu1 %v1906_v49  ;;  %v1938_v49 = vld [vmem:[#allocation4 + $0xd8] sm:$0xff]  }
  0x3e   :  { %559 = vmatpush2.bf16.msra.mxu0 %v1869_v34  ;;  %1639 = vmatprep.subr.bf16.mxu1 %v1910_v50  ;;  %v1939_v50 = vld [vmem:[#allocation4 + $0xd0] sm:$0xff]  }
  0x3f   :  { %560 = vmatprep.subr.bf16.mxu0 %v1871_v36 }
  0x40   :  { %616 = vmatmul.mubr.bf16.vlgmr.msra.gmra.mxu1 %v298_v53  ;;  %v210_v53 = vld [vmem:[%s2171_s4 + $0x1] ss:$0 sm:$0xff] }
  0x41   :  { %1640 = vmatpush3.bf16.msra.mxu1 %v1911_v51  ;;  %v1941_v51 = vld [vmem:[#allocation4 + $0xc8] sm:$0xff]  }
  0x42   :  { %561 = vmatpush2.bf16.msra.mxu0 %v1875_v39  ;;  %1641 = vmatprep.subr.bf16.mxu1 %v1912_v54 }
  0x43   :  { %562 = vmatprep.subr.bf16.mxu0 %v1877_v45  ;;  %v1935_v45 = vld [vmem:[#allocation4 + $0xf0] sm:$0xff]  }
  0x45   :  { %1642 = vmatpush3.bf16.msra.mxu1 %v1913_v56 }
  0x46   :  { %563 = vmatpush2.bf16.msra.mxu0 %v1881_v46  ;;  %1643 = vmatprep.subr.bf16.mxu1 %v1914_v58  ;;  %v1940_v46 = vld [vmem:[#allocation4 + $0x178] sm:$0xff]  }
  0x47   :  { %564 = vmatprep.subr.bf16.mxu0 %v1883_v48  ;;  %v1937_v48 = vld [vmem:[#allocation4 + $0xe0] sm:$0xff]  }
  0x49   :  { %1644 = vmatpush3.bf16.msra.mxu1 %v1915_v60  ;;  %v1942_v60 = vld [vmem:[#allocation4 + $0x138] sm:$0xff]  }
  0x4a   :  { %565 = vmatpush2.bf16.msra.mxu0 %v1887_v52  ;;  %1645 = vmatprep.subr.bf16.mxu1 %v1916_v62  ;;  %v1943_v62 = vld [vmem:[#allocation4 + $0x170] sm:$0xff]  }
  0x4b   :  { %566 = vmatprep.subr.bf16.mxu0 %v1889_v55 }
  0x4d   :  { %1646 = vmatpush3.bf16.msra.mxu1 %v1917_v0  ;;  %v1945_v0 = vld [vmem:[#allocation4 + $0x130] sm:$0xff]  }
  0x4e   :  { %567 = vmatpush2.bf16.msra.mxu0 %v1893_v57  ;;  %1647 = vmatprep.subr.bf16.mxu1 %v1918_v4  ;;  %v1950_v4 = vld [vmem:[#allocation4 + $0x160] sm:$0xff]  }
  0x4f   :  { %568 = vmatprep.subr.bf16.mxu0 %v1895_v59 }
  0x51   :  { %1648 = vmatpush3.bf16.msra.mxu1 %v1919_v5  ;;  %v1952_v5 = vld [vmem:[#allocation4 + $0x120] sm:$0xff]  }
  0x52   :  { %569 = vmatpush2.bf16.msra.mxu0 %v1899_v61  ;;  %1649 = vmatprep.subr.bf16.mxu1 %v1920_v6  ;;  %v1954_v6 = vld [vmem:[#allocation4 + $0x158] sm:$0xff]  }
  0x53   :  { %570 = vmatprep.subr.bf16.mxu0 %v1901_v63  ;;  %v1944_v63 = vld [vmem:[#allocation4 + $0xc0] sm:$0xff]  }
  0x55   :  { %1650 = vmatpush3.bf16.msra.mxu1 %v1921_v7  ;;  %v1956_v7 = vld [vmem:[#allocation4 + $0x118] sm:$0xff]  }
  0x56   :  { %571 = vmatpush2.bf16.msra.mxu0 %v1905_v1  ;;  %1651 = vmatprep.subr.bf16.mxu1 %v1922_v8  ;;  %v1946_v1 = vld [vmem:[#allocation4 + $0x168] sm:$0xff]   ;;  %v1958_v8 = vld [vmem:[#allocation4 + $0x150] sm:$0xff]  }
  0x57   :  { %572 = vmatprep.subr.bf16.mxu0 %v1907_v2  ;;  %v1947_v2 = vld [vmem:[#allocation4 + $0x1f8] sm:$0xff]  }
  0x59   :  { %1652 = vmatpush3.bf16.msra.mxu1 %v1923_v9  ;;  %v1960_v9 = vld [vmem:[#allocation4 + $0x110] sm:$0xff]  }
  0x5a   :  { %573 = vmatpush2.bf16.msra.mxu0 %v1909_v3  ;;  %1653 = vmatprep.subr.bf16.mxu1 %v1924_v10  ;;  %v1948_v3 = vld [vmem:[#allocation4 + $0x128] sm:$0xff]  }
  0x5b   :  { %1743 = vmatprep.subr.bf16.mxu0 %v2046_v13  ;;  %v1962_v10 = vld [vmem:[#allocation4 + $0x148] sm:$0xff]  }
  0x5d   :  { %575 = vmatmul.mubr.bf16.vlgmr.msra.gmra.mxu0 %v290_v47  ;;  %1654 = vmatpush3.bf16.msra.mxu1 %v1925_v11  ;;  %v1936_v47 = vld [vmem:[#allocation4 + $0xe8] sm:$0xff]  }
  0x5e   :  { %1763 = vmatprep.subr.bf16.mxu1 %v2046_v13  ;;  %1744 = vmatpush3.bf16.msra.mxu0 %v1926_v12  ;;  %v1964_v11 = vld [vmem:[#allocation4 + $0x108] sm:$0xff]   ;;  %v1966_v12 = vld [vmem:[#allocation4 + $0x140] sm:$0xff]  }
  0x5f   :  { %1745 = vmatprep.subr.bf16.mxu0 %v2046_v13  ;;  %1759 = vmatprep.mubr.msk.bf16.mxu0 %vm2047_vm0, %v2046_v13 }
  0x62   :  { %1746 = vmatpush3.bf16.msra.mxu0 %v1927_v14  ;;  %v1968_v14 = vld [vmem:[#allocation4 + $0x100] sm:$0xff]  }
  0x63   :  { %1747 = vmatprep.subr.bf16.mxu0 %v2046_v13 }
  0x66   :  { %1748 = vmatpush3.bf16.msra.mxu0 %v1928_v15  ;;  %v945_v15 = vld [vmem:[%s2167_s0] sm:$0xff] }
  0x67   :  { %1749 = vmatprep.subr.bf16.mxu0 %v2046_v13 }
  0x6a   :  { %1750 = vmatpush3.bf16.msra.mxu0 %v1929_v16  ;;  %v1586_v16 = vcombine.low %v945_v15, %v945_v15 }
  0x6b   :  { %1751 = vmatprep.subr.bf16.mxu0 %v2046_v13 }
  0x6e   :  { %1752 = vmatpush3.bf16.msra.mxu0 %v1930_v17  ;;  %v1587_v17 = vcombine.high %v945_v15, %v945_v15 }
  0x6f   :  { %1753 = vmatprep.subr.bf16.mxu0 %v2046_v13 }
  0x72   :  { %1754 = vmatpush3.bf16.msra.mxu0 %v1931_v41  ;;  %v1972_v41 = vld [vmem:[#allocation4 + $0x1c8] sm:$0xff]  }
  0x73   :  { %1755 = vmatprep.subr.bf16.mxu0 %v2046_v13 }
  0x76   :  { %1756 = vmatpush3.bf16.msra.mxu0 %v1932_v42  ;;  %v1973_v42 = vld [vmem:[#allocation4 + $0x188] sm:$0xff]  }
  0x77   :  { %1757 = vmatprep.subr.bf16.mxu0 %v2046_v13 }
  0x7a   :  { %1758 = vmatpush3.bf16.msra.mxu0 %v1933_v43  ;;  %v1974_v43 = vld [vmem:[#allocation4 + $0x1c0] sm:$0xff]  }
  0x7b   :  { %1679 = vmatprep.subr.bf16.mxu0 %v1940_v46  ;;  %v1978_v46 = vld [vmem:[#allocation4 + $0x278] sm:$0xff]  }
 0x100   :  { %v617_v18 = vpop.f32.mrf.mxu1 }
 0x102   :  { %v619_v19 = vpop.f32.mrf.mxu1 }
 0x104   :  { %v621_v20 = vpop.f32.mrf.mxu1 }
 0x106   :  { %v622_v21 = vpop.f32.mrf.mxu1 }
 0x107   :  { %v946_v21 = vld [vmem:[%s2167_s0 + $0x8] sm:$0xff] }
 0x11d   :  { %v576_v28 = vpop.f32.mrf.mxu0 }
 0x11e   :  { %v577_v29 = vadd.f32 %v576_v28, %v268_v26  ;;  %v1949_v26 = vld [vmem:[#allocation4 + $0x1b8] sm:$0xff]  }
 0x11f   :  { %v578_v30 = vpop.f32.mrf.mxu0 }
 0x120   :  { %v618_v31 = vadd.f32 %v617_v18, %v577_v29  ;;  %v579_v33 = vadd.f32 %v578_v30, %v272_v27  ;;  %v211_v18 = vld [vmem:[%s2171_s4 + $0x2] ss:$0 sm:$0xff]  ;;  %v1589_v27 = vcombine.high %v946_v21, %v946_v21  ;;  %v1951_v29 = vld [vmem:[#allocation4 + $0x1f0] sm:$0xff]  }
 0x121   :  { %v580_v34 = vpop.f32.mrf.mxu0 }
 0x122   :  { %v620_v35 = vadd.f32 %v619_v19, %v579_v33  ;;  %v624_v36 = vmax.f32 %v618_v31, 0.0  ;;  %v1953_v31 = vld [vmem:[#allocation4 + $0x1b0] sm:$0xff]   ;;  %v1955_v33 = vld [vmem:[#allocation4 + $0x1e8] sm:$0xff]  }
 0x123   :  { %v581_v37 = vpop.f32.mrf.mxu0  ;;  %v1957_v34 = vld [vmem:[#allocation4 + $0x1a8] sm:$0xff]  }
 0x124   :  { %v625_v38 = vmax.f32 %v620_v35, 0.0  ;;  %v626_v40 = vpack.c.bf16 %v624_v36, %v624_v36  ;;  %v1959_v35 = vld [vmem:[#allocation4 + $0x1e0] sm:$0xff]   ;;  %v1963_v37 = vld [vmem:[#allocation4 + $0x1d8] sm:$0xff]  }
 0x125   :  { %v1961_v36 = vld [vmem:[#allocation4 + $0x1a0] sm:$0xff]  }
 0x126   :  { %v627_v39 = vpack.c.bf16 %v625_v38, %v625_v38  ;;  %v1965_v38 = vld [vmem:[#allocation4 + $0x198] sm:$0xff]  }
 0x128   :  { %756 = vmatprep.mubr.bf16.mxu1 %v627_v39  ;;  %v1967_v39 = vld [vmem:[#allocation4 + $0x1d0] sm:$0xff]  }
 0x129   :  { %757 = vmatmul.mubr.bf16.vlgmr.msra.gmra.mxu1 %v626_v40  ;;  %v1969_v40 = vld [vmem:[#allocation4 + $0x190] sm:$0xff]  }
 0x12a   :  { %1779 = vmatprep.mubr.msk.bf16.mxu1 %vm2047_vm0, %v2046_v13  ;;  %1764 = vmatpush3.bf16.msra.mxu1 %v1934_v44  ;;  %v1975_v44 = vld [vmem:[#allocation4 + $0x180] sm:$0xff]  }
 0x12b   :  { %1765 = vmatprep.subr.bf16.mxu1 %v2046_v13 }
 0x12e   :  { %1766 = vmatpush3.bf16.msra.mxu1 %v1935_v45  ;;  %v1588_v45 = vcombine.low %v946_v21, %v946_v21  ;;  %v1991_v21 = vld [vmem:[#allocation4 + $0x210] sm:$0xff]  }
 0x12f   :  { %1767 = vmatprep.subr.bf16.mxu1 %v2046_v13 }
 0x132   :  { %1768 = vmatpush3.bf16.msra.mxu1 %v1936_v47  ;;  %v1979_v47 = vld [vmem:[#allocation4 + $0x270] sm:$0xff]  }
 0x133   :  { %1769 = vmatprep.subr.bf16.mxu1 %v2046_v13 }
 0x136   :  { %1770 = vmatpush3.bf16.msra.mxu1 %v1937_v48  ;;  %v1980_v48 = vld [vmem:[#allocation4 + $0x268] sm:$0xff]  }
 0x137   :  { %1771 = vmatprep.subr.bf16.mxu1 %v2046_v13 }
 0x13a   :  { %1772 = vmatpush3.bf16.msra.mxu1 %v1938_v49  ;;  %v1981_v49 = vld [vmem:[#allocation4 + $0x260] sm:$0xff]  }
 0x13b   :  { %1773 = vmatprep.subr.bf16.mxu1 %v2046_v13 }
 0x13e   :  { %1774 = vmatpush3.bf16.msra.mxu1 %v1939_v50  ;;  %v1982_v50 = vld [vmem:[#allocation4 + $0x258] sm:$0xff]  }
 0x13f   :  { %1775 = vmatprep.subr.bf16.mxu1 %v2046_v13 }
 0x142   :  { %1776 = vmatpush3.bf16.msra.mxu1 %v1941_v51  ;;  %v1983_v51 = vld [vmem:[#allocation4 + $0x250] sm:$0xff]  }
 0x143   :  { %1777 = vmatprep.subr.bf16.mxu1 %v2046_v13 }
 0x146   :  { %1778 = vmatpush3.bf16.msra.mxu1 %v1944_v63 }
 0x147   :  { %1701 = vmatprep.subr.bf16.mxu1 %v1947_v2 }
 0x1e9   :  { %v1655_v52 = vpop.f32.mrf.mxu1 }
 0x1eb   :  { %v1656_v54 = vpop.f32.mrf.mxu1 }
 0x1ec   :  { %v1657_v55 = vadd.f32 %v1656_v54, %v1655_v52  ;;  %v1984_v52 = vld [vmem:[#allocation4 + $0x248] sm:$0xff]  }
 0x1ed   :  { %v1658_v56 = vpop.f32.mrf.mxu1 }
 0x1ee   :  { %v759_v57 = vadd.f32 %v1657_v55, %v210_v53  ;;  %v1985_v53 = vld [vmem:[#allocation4 + $0x240] sm:$0xff]  }
 0x1ef   :  { %v1659_v58 = vpop.f32.mrf.mxu1 }
 0x1f0   :  { %v764_v59 = vmax.f32 %v759_v57, 0.0 }
 0x1f2   :  { %v765_v61 = vpack.c.bf16 %v764_v59, %v764_v59  ;;  %v212_v59 = vld [vmem:[%s2171_s4 + $0x3] ss:$0 sm:$0xff] }
 0x1f4   :  { %1760 = vmatmul.mubr.bf16.vlgmr.msra.gmra.mxu0 %v765_v61 }
 0x1f5   :  { %1680 = vmatpush3.bf16.msra.mxu0 %v1942_v60  ;;  %1185 = vmatprep.mubr.bf16.mxu0 %v1587_v17  ;;  %v1987_v17 = vld [vmem:[#allocation4 + $0x230] sm:$0xff]  }
 0x1f6   :  { %1681 = vmatprep.subr.bf16.mxu0 %v1943_v62 }
 0x1f9   :  { %1682 = vmatpush3.bf16.msra.mxu0 %v1945_v0 }
 0x1fa   :  { %1683 = vmatprep.subr.bf16.mxu0 %v1946_v1 }
 0x1fd   :  { %1684 = vmatpush3.bf16.msra.mxu0 %v1948_v3  ;;  %v1240_v3 = vadd.s32 1, %v2085_v32 }
 0x1fe   :  { %1685 = vmatprep.subr.bf16.mxu0 %v1950_v4  ;;  %v1237_v4 = vand.u32 127, %v265_v25 }
 0x201   :  { %1686 = vmatpush3.bf16.msra.mxu0 %v1952_v5  ;;  %v1238_v5 = vmul.u32 4, %v2085_v32  ;;  %v1986_v32 = vld [vmem:[#allocation4 + $0x238] sm:$0xff]  }
 0x202   :  { %1687 = vmatprep.subr.bf16.mxu0 %v1954_v6  ;;  %v1241_v6 = vmul.u32 4, %v1240_v3 }
 0x203   :  { %vm1239_vm1 = vcmp.ge.s32.totalorder %v1237_v4, %v1238_v5 }
 0x204   :  { %vm1242_vm2 = vcmp.lt.s32.totalorder %v1237_v4, %v1241_v6 }
 0x205   :  { %1688 = vmatpush3.bf16.msra.mxu0 %v1956_v7  ;;  %v213_v7 = vld [vmem:[%s2171_s4 + $0x4] ss:$0 sm:$0xff]  ;;  %vm1243_vm3 = vmand %vm1239_vm1, %vm1242_vm2 }
 0x206   :  { %1689 = vmatprep.subr.bf16.mxu0 %v1958_v8  ;;  %v1244_v25 = vsel %vm1243_vm3, 0.25, %v2046_v13 }
 0x209   :  { %1690 = vmatpush3.bf16.msra.mxu0 %v1960_v9 }
 0x20a   :  { %1691 = vmatprep.subr.bf16.mxu0 %v1962_v10 }
 0x20d   :  { %1692 = vmatpush3.bf16.msra.mxu0 %v1964_v11 }
 0x20e   :  { %1693 = vmatprep.subr.bf16.mxu0 %v1966_v12 }
 0x211   :  { %1694 = vmatpush3.bf16.msra.mxu0 %v1968_v14 }
 0x212   :  { %1783 = vmatprep.subr.mxu0 %v2046_v13 }
 0x214   :  { %1186 = vmatmul.mubr.bf16.vlgmr.msra.gmra.mxu0 %v1586_v16 }
 0x215   :  { %1785 = vmatprep.mubr.msk.f32.mxu0 %vm2047_vm0, %v2046_v13 }
 0x2b4   :  { %v848_v19 = vpop.f32.mrf.mxu0 }
 0x2b5   :  { %v849_v20 = vadd.f32 %v848_v19, %v211_v18  ;;  %v1988_v18 = vld [vmem:[#allocation4 + $0x228] sm:$0xff]   ;;  %v1989_v19 = vld [vmem:[#allocation4 + $0x220] sm:$0xff]  }
 0x2b6   :  { %v1761_v22 = vpop.f32.mrf.mxu0 }
 0x2b7   :  { %v854_v23 = vmax.f32 %v849_v20, 0.0  ;;  %v1990_v20 = vld [vmem:[#allocation4 + $0x218] sm:$0xff]   ;;  %v1992_v22 = vld [vmem:[#allocation4 + $0x208] sm:$0xff]  }
 0x2b8   :  { %v851_v24 = vpop.f32.mrf.mxu0 }
 0x2b9   :  { %v855_v28 = vpack.c.bf16 %v854_v23, %v854_v23  ;;  %v1993_v23 = vld [vmem:[#allocation4 + $0x200] sm:$0xff]  }
 0x2ba   :  { %v1762_v30 = vpop.f32.mrf.mxu0 }
 0x2bb   :  { %1780 = vmatmul.mubr.bf16.vlgmr.msra.gmra.mxu1 %v855_v28 }
 0x2bc   :  { %1702 = vmatpush3.bf16.msra.mxu1 %v1949_v26  ;;  %1225 = vmatprep.mubr.bf16.mxu1 %v1589_v27 }
 0x2bd   :  { %1703 = vmatprep.subr.bf16.mxu1 %v1951_v29 }
 0x2c0   :  { %1704 = vmatpush3.bf16.msra.mxu1 %v1953_v31 }
 0x2c1   :  { %1705 = vmatprep.subr.bf16.mxu1 %v1955_v33  ;;  %v214_v33 = vld [vmem:[%s2171_s4 + $0x5] ss:$0 sm:$0xff] }
 0x2c4   :  { %1706 = vmatpush3.bf16.msra.mxu1 %v1957_v34 }
 0x2c5   :  { %1707 = vmatprep.subr.bf16.mxu1 %v1959_v35 }
 0x2c8   :  { %1708 = vmatpush3.bf16.msra.mxu1 %v1961_v36 }
 0x2c9   :  { %1709 = vmatprep.subr.bf16.mxu1 %v1963_v37 }
 0x2cc   :  { %1710 = vmatpush3.bf16.msra.mxu1 %v1965_v38 }
 0x2cd   :  { %1711 = vmatprep.subr.bf16.mxu1 %v1967_v39 }
 0x2d0   :  { %1712 = vmatpush3.bf16.msra.mxu1 %v1969_v40 }
 0x2d1   :  { %1713 = vmatprep.subr.bf16.mxu1 %v1972_v41 }
 0x2d4   :  { %1714 = vmatpush3.bf16.msra.mxu1 %v1973_v42  ;;  %v1695_v54 = vpop.f32.mrf.mxu0 }
 0x2d5   :  { %1715 = vmatprep.subr.bf16.mxu1 %v1974_v43 }
 0x2d6   :  { %v1696_v55 = vpop.f32.mrf.mxu0 }
 0x2d7   :  { %v1697_v56 = vadd.f32 %v1696_v55, %v1695_v54 }
 0x2d8   :  { %1716 = vmatpush3.bf16.msra.mxu1 %v1975_v44  ;;  %v1698_v57 = vpop.f32.mrf.mxu0 }
 0x2d9   :  { %1788 = vmatprep.subr.bf16.mxu1 %v2046_v13  ;;  %v1188_v10 = vadd.f32 %v1697_v56, %v213_v7 }
 0x2da   :  { %v1699_v58 = vpop.f32.mrf.mxu0 }
 0x2db   :  { %1226 = vmatmul.mubr.bf16.vlgmr.msra.gmra.mxu1 %v1588_v45 }
 0x2dc   :  { %1789 = vmatpush3.bf16.msra.mxu1 %v1978_v46  ;;  %1804 = vmatprep.mubr.msk.bf16.mxu1 %vm2047_vm0, %v2046_v13 }
 0x2dd   :  { %1790 = vmatprep.subr.bf16.mxu1 %v2046_v13 }
 0x2e0   :  { %1791 = vmatpush3.bf16.msra.mxu1 %v1979_v47 }
 0x2e1   :  { %1792 = vmatprep.subr.bf16.mxu1 %v2046_v13 }
 0x2e4   :  { %1793 = vmatpush3.bf16.msra.mxu1 %v1980_v48 }
 0x2e5   :  { %1794 = vmatprep.subr.bf16.mxu1 %v2046_v13 }
 0x2e8   :  { %1795 = vmatpush3.bf16.msra.mxu1 %v1981_v49 }
 0x2e9   :  { %1796 = vmatprep.subr.bf16.mxu1 %v2046_v13 }
 0x2ec   :  { %1797 = vmatpush3.bf16.msra.mxu1 %v1982_v50 }
 0x2ed   :  { %1798 = vmatprep.subr.bf16.mxu1 %v2046_v13 }
 0x2f0   :  { %1799 = vmatpush3.bf16.msra.mxu1 %v1983_v51 }
 0x2f1   :  { %1800 = vmatprep.subr.bf16.mxu1 %v2046_v13 }
 0x2f4   :  { %1801 = vmatpush3.bf16.msra.mxu1 %v1984_v52 }
 0x2f5   :  { %1802 = vmatprep.subr.bf16.mxu1 %v2046_v13 }
 0x2f8   :  { %1803 = vmatpush3.bf16.msra.mxu1 %v1985_v53 }
 0x37b   :  { %v938_v60 = vpop.f32.mrf.mxu1 }
 0x37c   :  { %v939_v61 = vadd.f32 %v938_v60, %v212_v59 }
 0x37d   :  { %v1781_v62 = vpop.f32.mrf.mxu1 }
 0x37e   :  { %v944_v63 = vmax.f32 %v939_v61, 0.0 }
 0x37f   :  { %v941_v0 = vpop.f32.mrf.mxu1 }
 0x380   :  { %v1320_v1 = vpack.c.bf16 %v944_v63, %v944_v63 }
 0x381   :  { %v1782_v2 = vpop.f32.mrf.mxu1 }
 0x382   :  { %1805 = vmatmul.mubr.bf16.vlgmr.msra.gmra.mxu1 %v1320_v1 }
 0x39b   :  { %v1717_v8 = vpop.f32.mrf.mxu1 }
 0x39d   :  { %v1718_v9 = vpop.f32.mrf.mxu1 }
 0x39e   :  { %v1719_v11 = vadd.f32 %v1718_v9, %v1717_v8 }
 0x39f   :  { %v1720_v12 = vpop.f32.mrf.mxu1 }
 0x3a0   :  { %v1228_v14 = vadd.f32 %v1719_v11, %v1188_v10 }
 0x3a1   :  { %v1721_v15 = vpop.f32.mrf.mxu1 }
 0x3a2   :  { %v1233_v16 = vmax.f32 %v1228_v14, 0.0 }
 0x3a4   :  { %1784 = vmatpush3.msra.mxu0 %v1233_v16 }
 0x3a5   :  { %1786 = vmatmul.mubr.msk.f32.vlgmr.msra.gmra.mxu0 %vm1245_vm4, %v1244_v25  ;;  %1808 = vmatprep.subr.bf16.mxu0 %v2046_v13 }
 0x3a6   :  { %1824 = vmatprep.mubr.msk.bf16.mxu0 %vm2047_vm0, %v2046_v13  ;;  %1809 = vmatpush3.bf16.msra.mxu0 %v1986_v32 }
 0x3a7   :  { %1810 = vmatprep.subr.bf16.mxu0 %v2046_v13 }
 0x3aa   :  { %1811 = vmatpush3.bf16.msra.mxu0 %v1987_v17 }
 0x3ab   :  { %1812 = vmatprep.subr.bf16.mxu0 %v2046_v13 }
 0x3ae   :  { %1813 = vmatpush3.bf16.msra.mxu0 %v1988_v18 }
 0x3af   :  { %1814 = vmatprep.subr.bf16.mxu0 %v2046_v13 }
 0x3b2   :  { %1815 = vmatpush3.bf16.msra.mxu0 %v1989_v19 }
 0x3b3   :  { %1816 = vmatprep.subr.bf16.mxu0 %v2046_v13 }
 0x3b6   :  { %1817 = vmatpush3.bf16.msra.mxu0 %v1990_v20 }
 0x3b7   :  { %1818 = vmatprep.subr.bf16.mxu0 %v2046_v13 }
 0x3ba   :  { %1819 = vmatpush3.bf16.msra.mxu0 %v1991_v21 }
 0x3bb   :  { %1820 = vmatprep.subr.bf16.mxu0 %v2046_v13 }
 0x3be   :  { %1821 = vmatpush3.bf16.msra.mxu0 %v1992_v22 }
 0x3bf   :  { %1822 = vmatprep.subr.bf16.mxu0 %v2046_v13 }
 0x3c2   :  { %1823 = vmatpush3.bf16.msra.mxu0 %v1993_v23 }
 0x442   :  { %v1403_v24 = vpop.f32.mrf.mxu1 }
 0x444   :  { %v1806_v26 = vpop.f32.mrf.mxu1 }
 0x446   :  { %v1406_v27 = vpop.f32.mrf.mxu1 }
 0x448   :  { %v1807_v28 = vpop.f32.mrf.mxu1 }
 0x465   :  { %v1315_v29 = vpop.f32.mrf.mxu0 }
 0x466   :  { %v1319_v30 = vpack.c.bf16 %v1315_v29, %v1315_v29 }
 0x467   :  { %v1787_v31 = vpop.f32.mrf.mxu0 }
 0x468   :  { %1825 = vmatmul.mubr.bf16.vlgmr.msra.gmra.mxu0 %v1319_v30 }
 0x528   :  { %v1491_v34 = vpop.f32.mrf.mxu0 }
 0x529   :  { %v1492_v35 = vadd.f32 %v1491_v34, %v1403_v24 }
 0x52a   :  { %v1826_v36 = vpop.f32.mrf.mxu0 }
 0x52b   :  { %v1497_v37 = vadd.f32 %v1492_v35, %v214_v33 }
 0x52c   :  { %v1494_v38 = vpop.f32.mrf.mxu0 }
 0x52d   :  { %1498 = vst [vmem:[%s2172_s5] sm:$0x3] %v1497_v37 }
 0x52e   :  { %v1827_v13 = vpop.f32.mrf.mxu0 }
 0x52f   :  { %1503 = vsyncpa [#allocation3], 1 }
 0x530   :  { %1504 = vsyncpa [#allocation5], 1 }

</bundles_post_ra>
